<compile_context>
chip_gen: v5e
topology: v5e:2x2
jax: 0.10.0
libtpu: 0.0.40
codegen_flags: <defaults>
</compile_context>

<pallas_src>
import jax
import jax.numpy as jnp
from jax.experimental import pallas as pl
from jax.experimental.pallas import tpu as pltpu


EPSILON = 1e-6
_TARGET_TILE_BYTES = 2 * 1024 * 1024   # ~2 MiB input tile (sweepable 1-4 MiB)
_MAX_TM = 2048                          # upper bound on rows per block


def _encoder_norm_kernel(alpha_ref, beta_ref, x_ref, o_ref):
    # alpha_ref, beta_ref: (1,) scalars in SMEM
    # x_ref, o_ref:        (tm, d_model) tiles in VMEM
    x = x_ref[...].astype(jnp.float32)          # f32 math in-register (v5e: no bf16 VPU)
    d = x.shape[-1]
    mean = jnp.mean(x, axis=-1, keepdims=True)
    centered = x - mean
    # torch.std default is the unbiased estimator (ddof = 1).
    var = jnp.sum(centered * centered, axis=-1, keepdims=True) * (1.0 / max(d - 1, 1))
    std = jnp.sqrt(var)
    # Per-row reciprocal (shape (tm,1)), exact to keep bit-closeness to the divide;
    # alpha is folded into the per-row scale, epilogue is one broadcast mul-add.
    inv = pl.reciprocal(std + EPSILON, approx=False)
    scale = alpha_ref[0] * inv
    o_ref[...] = (centered * scale + beta_ref[0]).astype(o_ref.dtype)


def encoder_layer_norm(x, alpha, beta, *, tm=None):
    """Final LayerNormilization of the Encoder.

    x: (batch, seq, d_model); alpha, beta: scalar parameters (shape (1,)).
    """
    batch, seq, d_model = x.shape
    M = batch * seq
    itemsize = jnp.dtype(x.dtype).itemsize
    row_bytes = d_model * itemsize

    if tm is None:
        # Byte-budgeted row tile: big enough to amortize the ~0.35us per-grid-step
        # overhead, small enough to fit v7x's VMEM with in-kernel f32 temporaries.
        tm = max(8, (_TARGET_TILE_BYTES // max(row_bytes, 1)) // 8 * 8)
        tm = min(tm, _MAX_TM)
    else:
        tm = max(8, (int(tm) // 8) * 8)
    # Don't exceed the (8-rounded) row count; tm must be a multiple of 8 (sublane).
    tm = min(tm, max(8, ((M + 7) // 8) * 8))

    x2d = x.reshape(M, d_model)
    alpha = jnp.asarray(alpha, jnp.float32).reshape(1)
    beta = jnp.asarray(beta, jnp.float32).reshape(1)

    # VMEM footprint: double-buffered input + output tiles, plus ~4 tile-sized f32
    # temporaries inside the kernel (x_f32, centered, product, result).
    in_tile = tm * d_model * itemsize
    f32_tile = tm * d_model * 4
    vmem_limit = int(4 * in_tile + 4 * f32_tile + (2 << 20))
    vmem_limit = max(vmem_limit, 16 * 1024 * 1024)
    vmem_limit = min(vmem_limit, 48 * 1024 * 1024)   # stay inside v7x's 64 MiB VMEM

    cost = pl.CostEstimate(
        flops=8 * M * d_model,          # mean, center, square, sum, scale, shift
        transcendentals=2 * M,          # sqrt + reciprocal per row
        bytes_accessed=2 * M * d_model * itemsize,
    )

    out2d = pl.pallas_call(
        _encoder_norm_kernel,
        out_shape=jax.ShapeDtypeStruct((M, d_model), x.dtype),
        grid=(pl.cdiv(M, tm),),         # ragged last block: reads padded, writes masked
        in_specs=[
            pl.BlockSpec(memory_space=pltpu.MemorySpace.SMEM),   # alpha (scalar)
            pl.BlockSpec(memory_space=pltpu.MemorySpace.SMEM),   # beta  (scalar)
            pl.BlockSpec((tm, d_model), lambda i: (i, 0)),       # x rows
        ],
        out_specs=pl.BlockSpec((tm, d_model), lambda i: (i, 0)),
        compiler_params=pltpu.CompilerParams(
            dimension_semantics=("parallel",),
            vmem_limit_bytes=vmem_limit,
        ),
        cost_estimate=cost,
    )(alpha, beta, x2d)

    return out2d.reshape(batch, seq, d_model)


def encoder_forward(x, mask, layers, alpha, beta):
    """Encoder.forward: apply each layer(x, mask), then the final LayerNormilization."""
    # TODO(synk): the spec passes an opaque nn.ModuleList; the sub-layer architecture
    # is not defined in the reference, so layers are treated as user-supplied JAX
    # callables and only the final norm is implemented as a Pallas kernel.
    for layer in layers:
        x = layer(x, mask)
    return encoder_layer_norm(x, alpha, beta)


def _reference_norm(x, alpha, beta):
    mean = jnp.mean(x, axis=-1, keepdims=True)
    std = jnp.std(x, axis=-1, keepdims=True, ddof=1)
    return alpha[0] * (x - mean) / (std + EPSILON) + beta[0]


if __name__ == "__main__":
    key = jax.random.PRNGKey(0)

    # LayerNormilization parameters at their initial values: alpha=ones(1), beta=zeros(1).
    alpha = jnp.ones((1,), jnp.float32)
    beta = jnp.zeros((1,), jnp.float32)

    # --- main test: shapes consistent with the module's forward ---
    batch, seq, d_model = 2, 8, 32
    x = jax.random.normal(key, (batch, seq, d_model), jnp.float32)
    mask = jnp.ones((batch, 1, seq, seq), jnp.float32)
    layers = ()   # no concrete encoder-block class is defined in the spec

    out = encoder_forward(x, mask, layers, alpha, beta)
    out = jax.block_until_ready(out)
    ref = _reference_norm(x, alpha, beta)
    assert out.shape == (batch, seq, d_model)
    assert jnp.allclose(out, ref, atol=1e-5, rtol=1e-5)

    # --- ragged-tail test: M not a multiple of tm (exercises masked last block) ---
    key2 = jax.random.PRNGKey(1)
    x2 = jax.random.normal(key2, (3, 7, 32), jnp.float32)   # M = 21 rows
    out2 = jax.block_until_ready(encoder_layer_norm(x2, alpha, beta, tm=8))
    ref2 = _reference_norm(x2, alpha, beta)
    assert out2.shape == x2.shape
    assert jnp.allclose(out2, ref2, atol=1e-5, rtol=1e-5)

    print("KERNEL_OK")
</pallas_src>

<mosaic_0001>
module attributes {stable_mosaic.version = 11 : i64} {
  func.func @_encoder_norm_kernel(%arg0: i32, %arg1: memref<1xf32, #tpu.memory_space<smem>>, %arg2: memref<1xf32, #tpu.memory_space<smem>>, %arg3: memref<16x32xf32, #tpu.memory_space<vmem>>, %arg4: memref<16x32xf32, #tpu.memory_space<vmem>>) attributes {dimension_semantics = [#tpu.dimension_semantics<parallel>], iteration_bounds = array<i64: 1>, scalar_prefetch = 0 : i64, scratch_operands = 0 : i64, tpu.core_type = #tpu.core_type<tc>, window_params = [{transform_indices = @transform_0, window_bounds = array<i64: 1>}, {transform_indices = @transform_1, window_bounds = array<i64: 1>}, {transform_indices = @transform_2, window_bounds = array<i64: 16, 32>}, {transform_indices = @transform_3, window_bounds = array<i64: 16, 32>}]} {
    %c0 = arith.constant 0 : index
    %c0_0 = arith.constant 0 : index
    %0 = vector.load %arg3[%c0, %c0_0] : memref<16x32xf32, #tpu.memory_space<vmem>>, vector<16x32xf32>
    %cst = arith.constant dense<0.000000e+00> : vector<16xf32>
    %1 = vector.multi_reduction <add>, %0, %cst [1] : vector<16x32xf32> to vector<16xf32>
    %2 = vector.shape_cast %1 : vector<16xf32> to vector<16x1xf32>
    %cst_1 = arith.constant 3.200000e+01 : f32
    %3 = vector.broadcast %cst_1 : f32 to vector<16x1xf32>
    %4 = arith.divf %2, %3 : vector<16x1xf32>
    %5 = vector.broadcast %4 : vector<16x1xf32> to vector<16x32xf32>
    %6 = arith.subf %0, %5 : vector<16x32xf32>
    %7 = arith.mulf %6, %6 : vector<16x32xf32>
    %cst_2 = arith.constant dense<0.000000e+00> : vector<16xf32>
    %8 = vector.multi_reduction <add>, %7, %cst_2 [1] : vector<16x32xf32> to vector<16xf32>
    %9 = vector.shape_cast %8 : vector<16xf32> to vector<16x1xf32>
    %cst_3 = arith.constant 0.0322580636 : f32
    %10 = vector.broadcast %cst_3 : f32 to vector<16x1xf32>
    %11 = arith.mulf %9, %10 : vector<16x1xf32>
    %12 = math.sqrt %11 : vector<16x1xf32>
    %cst_4 = arith.constant 9.99999997E-7 : f32
    %13 = vector.broadcast %cst_4 : f32 to vector<16x1xf32>
    %14 = arith.addf %12, %13 : vector<16x1xf32>
    %15 = tpu.reciprocal %14 : vector<16x1xf32> -> vector<16x1xf32>
    %c0_5 = arith.constant 0 : index
    %16 = memref.load %arg1[%c0_5] : memref<1xf32, #tpu.memory_space<smem>>
    %17 = vector.broadcast %16 : f32 to vector<16x1xf32>
    %18 = arith.mulf %17, %15 : vector<16x1xf32>
    %19 = vector.broadcast %18 : vector<16x1xf32> to vector<16x32xf32>
    %20 = arith.mulf %6, %19 : vector<16x32xf32>
    %c0_6 = arith.constant 0 : index
    %21 = memref.load %arg2[%c0_6] : memref<1xf32, #tpu.memory_space<smem>>
    %22 = vector.broadcast %21 : f32 to vector<16x32xf32>
    %23 = arith.addf %20, %22 : vector<16x32xf32>
    %c0_7 = arith.constant 0 : index
    %c0_8 = arith.constant 0 : index
    %24 = vector.load %arg4[%c0_7, %c0_8] : memref<16x32xf32, #tpu.memory_space<vmem>>, vector<16x32xf32>
    tpu.vector_store %arg4[%c0_7, %c0_8], %23 {strides = array<i32>} : memref<16x32xf32, #tpu.memory_space<vmem>>, vector<16x32xf32>,
    return
  }
  func.func @transform_0(%arg0: i32) -> i32 {
    %c0_i32 = arith.constant 0 : i32
    %c0_i32_0 = arith.constant 0 : i32
    return %c0_i32 : i32
  }
  func.func @transform_1(%arg0: i32) -> i32 {
    %c0_i32 = arith.constant 0 : i32
    %c0_i32_0 = arith.constant 0 : i32
    return %c0_i32 : i32
  }
  func.func @transform_2(%arg0: i32) -> (i32, i32) {
    %c0_i32 = arith.constant 0 : i32
    %c0_i32_0 = arith.constant 0 : i32
    return %arg0, %c0_i32 : i32, i32
  }
  func.func @transform_3(%arg0: i32) -> (i32, i32) {
    %c0_i32 = arith.constant 0 : i32
    %c0_i32_0 = arith.constant 0 : i32
    return %arg0, %c0_i32 : i32, i32
  }
}

</mosaic_0001>

<bundles_post_ra>
// kernel: tpu_custom_call.1
= control target key start
LH: loop header
LB: loop body
LE: loop exit
PB: predicated region body
PF: predicated region fallthrough
CT: control target
= control target key end

     0   :  { %10 = vsyncpa [#allocation5], 0  ;;  %s274_s0 = inlined_call_operand.<no memory space> [shape: f32[1], index: 0, kind: input, shape index: {}]   ;;  %s275_s1 = inlined_call_operand.<no memory space> [shape: f32[1], index: 1, kind: input, shape index: {}]   ;;  %s276_s2 = inlined_call_operand.hbm [shape: f32[16,32], index: 2, kind: input, shape index: {}]   ;;  %s277_s3 = inlined_call_operand.hbm [shape: f32[16,32], index: 3, kind: output, shape index: {}]  }
   0x1   :  { %11 = vsyncpa [#allocation6], 0  ;;  %s20_s14 = sshll.u32 %s276_s2, 4  ;;  %s215_s15 = smov [#allocation4]   ;;  %s21_s14 = int_to_ptr.hbm [resolvable:$true] %s20_s14 }
   0x2   :  { %s22_s16 = sshll.u32 %s215_s15, 4  ;;  %s216_s17 = smov 128   ;;  %s23_s16 = int_to_ptr.vmem [resolvable:$true] %s22_s16 }
   0x3   :  { %s217_s18 = smov 8  }
   0x4   :  { %28 = dma.hbm_to_vmem [thread:$0]  %s21_s14, 256, %s23_s16, [#allocation5], %s216_s17, %s216_s17, %s217_s18  }
   0x5   :  { %211 = dma.done.wait [#allocation5], 256  }
   0x6   :  { %212 = vsyncadd [#allocation5], 4294967040  ;;  %vm35_vm0 = vcmask 261120   ;;  %v33_v0 = vld [vmem:[#allocation4] sm:$0xff]  ;;  %v34_v2 = vld [vmem:[#allocation4 + $0x8] sm:$0xff]  ;;  %v218_v4 = vmov 32.0   ;;  %v118_v56 = vstv %s274_s0  ;;  %v124_v63 = vstv %s275_s1 }
   0x7   :  { %v36_v1 = vsel %vm35_vm0, %v33_v0, 0.0  ;;  %v39_v3 = vsel %vm35_vm0, %v34_v2, 0.0  ;;  %153 = vrcp.f32 %v218_v4  ;;  %s219_s0 = smov [#allocation7]   ;;  %s135_s24 = sshll.u32 %s277_s3, 4  ;;  %s136_s24 = int_to_ptr.hbm [resolvable:$true] %s135_s24 }
   0x8   :  { %37 = vadd.xlane.f32.xlu0 %v36_v1  ;;  %s133_s22 = sshll.u32 %s219_s0, 4  ;;  %s134_s22 = int_to_ptr.vmem [resolvable:$true] %s133_s22 }
   0xd   :  { %v154_v5 = vpop.eup %153 }
   0xe   :  { %v43_v6 = vmul.f32 32.0, %v154_v5  ;;  %vm47_vm1 = vweird.f32 %v154_v5 }
  0x10   :  { %40 = vadd.xlane.f32.xlu0 %v39_v3  ;;  %v44_v7 = vsub.f32 1.0, %v43_v6 }
  0x12   :  { %v45_v8 = vmul.f32 %v154_v5, %v44_v7 }
  0x14   :  { %v46_v9 = vadd.f32 %v154_v5, %v45_v8 }
  0x16   :  { %v48_v10 = vsel %vm47_vm1, %v154_v5, %v46_v9 }
  0x7b   :  { %v38_v11 = vpop.xlane.xlu0 %37 }
  0x7c   :  { %v49_v12 = vmul.f32 %v48_v10, %v38_v11 }
  0x7e   :  { %v248_v13 = vsub.f32 %v33_v0, %v49_v12 }
  0x80   :  { %v53_v14 = vmul.f32 %v248_v13, %v248_v13 }
  0x82   :  { %v55_v15 = vsel %vm35_vm0, %v53_v14, 0.0 }
  0x83   :  { %56 = vadd.xlane.f32.xlu1 %v55_v15  ;;  %v41_v16 = vpop.xlane.xlu0 %40 }
  0x84   :  { %v50_v17 = vmul.f32 %v48_v10, %v41_v16 }
  0x86   :  { %v253_v18 = vsub.f32 %v34_v2, %v50_v17 }
  0x88   :  { %v54_v19 = vmul.f32 %v253_v18, %v253_v18 }
  0x8a   :  { %v58_v20 = vsel %vm35_vm0, %v54_v19, 0.0 }
  0x8b   :  { %59 = vadd.xlane.f32.xlu1 %v58_v20 }
  0xf6   :  { %v57_v21 = vpop.xlane.xlu1 %56 }
  0xf7   :  { %v61_v22 = vmul.f32 0.032258064, %v57_v21 }
  0xf9   :  { %155 = vrsqrt.f32 %v61_v22  ;;  %vm70_vm2 = vcmp.eq.f32.partialorder %v61_v22, inf  ;;  %v73_v35 = vand.u32 2147483648, %v61_v22  ;;  %vm72_vm3 = vcmp.eq.f32.partialorder %v61_v22, 0.0 }
  0xfe   :  { %v60_v23 = vpop.xlane.xlu1 %59 }
  0xff   :  { %v156_v24 = vpop.eup %155  ;;  %v62_v25 = vmul.f32 0.032258064, %v60_v23 }
 0x100   :  { %v64_v26 = vmul.f32 %v156_v24, %v61_v22 }
 0x101   :  { %157 = vrsqrt.f32 %v62_v25  ;;  %vm82_vm4 = vcmp.eq.f32.partialorder %v62_v25, inf  ;;  %v85_v43 = vand.u32 2147483648, %v62_v25  ;;  %vm84_vm5 = vcmp.eq.f32.partialorder %v62_v25, 0.0 }
 0x102   :  { %v65_v27 = vmul.f32 %v156_v24, %v64_v26 }
 0x104   :  { %v66_v28 = vmul.f32 0.5, %v65_v27 }
 0x106   :  { %v67_v29 = vsub.f32 1.5, %v66_v28 }
 0x107   :  { %v158_v30 = vpop.eup %157 }
 0x108   :  { %v68_v31 = vmul.f32 %v156_v24, %v67_v29  ;;  %v76_v32 = vmul.f32 %v158_v30, %v62_v25 }
 0x10a   :  { %v69_v33 = vmul.f32 %v68_v31, %v61_v22  ;;  %v77_v34 = vmul.f32 %v158_v30, %v76_v32 }
 0x10c   :  { %v71_v36 = vsel %vm70_vm2, %v61_v22, %v69_v33  ;;  %v78_v37 = vmul.f32 0.5, %v77_v34 }
 0x10d   :  { %v74_v38 = vsel %vm72_vm3, %v73_v35, %v71_v36 }
 0x10e   :  { %v87_v39 = vadd.f32 1e-06, %v74_v38  ;;  %v79_v40 = vsub.f32 1.5, %v78_v37 }
 0x110   :  { %159 = vrcp.f32 %v87_v39  ;;  %v80_v41 = vmul.f32 %v158_v30, %v79_v40  ;;  %v100_v50 = vand.u32 2147483648, %v87_v39  ;;  %v98_v52 = vand.u32 2147483647, %v87_v39 }
 0x111   :  { %vm94_vm7 = vweird.f32 %v87_v39 }
 0x112   :  { %v81_v42 = vmul.f32 %v80_v41, %v62_v25  ;;  %v101_v55 = vor.u32 1.1754944e-38, %v100_v50  ;;  %vm99_vm9 = vcmp.eq.f32.partialorder %v98_v52, 8.507059e+37 }
 0x114   :  { %v83_v44 = vsel %vm82_vm4, %v62_v25, %v81_v42 }
 0x115   :  { %v86_v45 = vsel %vm84_vm5, %v85_v43, %v83_v44 }
 0x116   :  { %v160_v46 = vpop.eup %159  ;;  %v88_v47 = vadd.f32 1e-06, %v86_v45 }
 0x117   :  { %v90_v48 = vmul.f32 %v160_v46, %v87_v39  ;;  %vm95_vm6 = vweird.f32 %v160_v46 }
 0x118   :  { %161 = vrcp.f32 %v88_v47  ;;  %vm96_vm8 = vmor %vm94_vm7, %vm95_vm6  ;;  %v114_v62 = vand.u32 2147483648, %v88_v47  ;;  %v112_v1 = vand.u32 2147483647, %v88_v47  ;;  %vm108_vm11 = vweird.f32 %v88_v47 }
 0x119   :  { %v91_v49 = vsub.f32 1.0, %v90_v48 }
 0x11a   :  { %v115_v5 = vor.u32 1.1754944e-38, %v114_v62  ;;  %vm113_vm13 = vcmp.eq.f32.partialorder %v112_v1, 8.507059e+37 }
 0x11b   :  { %v92_v51 = vmul.f32 %v160_v46, %v91_v49 }
 0x11d   :  { %v93_v53 = vadd.f32 %v160_v46, %v92_v51 }
 0x11e   :  { %v162_v54 = vpop.eup %161 }
 0x11f   :  { %v97_v57 = vsel %vm96_vm8, %v160_v46, %v93_v53  ;;  %v104_v58 = vmul.f32 %v162_v54, %v88_v47  ;;  %vm109_vm10 = vweird.f32 %v162_v54 }
 0x120   :  { %v102_v59 = vsel %vm99_vm9, %v101_v55, %v97_v57  ;;  %vm110_vm12 = vmor %vm108_vm11, %vm109_vm10 }
 0x121   :  { %v105_v60 = vsub.f32 1.0, %v104_v58  ;;  %v119_v61 = vmul.f32 %v118_v56, %v102_v59 }
 0x123   :  { %v106_v0 = vmul.f32 %v162_v54, %v105_v60  ;;  %v121_v2 = vmul.f32 %v119_v61, %v248_v13 }
 0x125   :  { %v107_v3 = vadd.f32 %v162_v54, %v106_v0  ;;  %v125_v4 = vadd.f32 %v124_v63, %v121_v2 }
 0x127   :  { %v111_v6 = vsel %vm110_vm12, %v162_v54, %v107_v3  ;;  %127 = vst.msk [vmem:[#allocation7] sm:$0xff] %vm35_vm0, %v125_v4 }
 0x128   :  { %v116_v7 = vsel %vm113_vm13, %v115_v5, %v111_v6 }
 0x129   :  { %v120_v8 = vmul.f32 %v118_v56, %v116_v7 }
 0x12b   :  { %v122_v9 = vmul.f32 %v120_v8, %v253_v18 }
 0x12d   :  { %v126_v10 = vadd.f32 %v124_v63, %v122_v9 }
 0x12f   :  { %128 = vst.msk [vmem:[#allocation7 + $0x8] sm:$0xff] %vm35_vm0, %v126_v10 }
 0x130   :  { %141 = dma.vmem_to_hbm [thread:$0]  %s134_s22, 256, %s136_s24, [#allocation6], %s216_s17, %s216_s17, %s217_s18  }
 0x131   :  { %213 = dma.done.wait [#allocation6], 256  }
 0x132   :  { %214 = vsyncadd [#allocation6], 4294967040 }
 0x133   :  { %146 = vsyncpa [#allocation5], 1 }
 0x134   :  { %147 = vsyncpa [#allocation6], 1 }

</bundles_post_ra>
